<compile_context>
chip_gen: v7x
topology: tpu7x:2x2x1
jax: 0.10.0
libtpu: 0.0.40
codegen_flags: <defaults>
</compile_context>

<pallas_src>
import jax
import jax.numpy as jnp
from jax.experimental import pallas as pl
from jax.experimental.pallas import tpu as pltpu


def _round_up(n, m):
    return ((n + m - 1) // m) * m


def _highway_stack_kernel(x_ref, w_ref, b_ref, o_ref, act_ref):
    """Grid = (row_tile i [parallel], layer l [arbitrary]).

    x_ref : (bm, Dp)        input row tile (resident across the layer axis)
    w_ref : (1, Dp, 2*Dp)   [gate_w | trans_w] for layer l
    b_ref : (1, 1, 2*Dp)    [gate_b | trans_b] for layer l
    o_ref : (bm, Dp)        output row tile (resident; written at last layer)
    act_ref: (bm, Dp) f32   running activation, VMEM-resident across layers
    """
    l = pl.program_id(1)

    @pl.when(l == 0)
    def _():
        act_ref[...] = x_ref[...].astype(jnp.float32)

    x = act_ref[...]                                        # (bm, Dp) f32
    dp = x.shape[1]

    # Single fused matmul: (bm, Dp) @ (Dp, 2*Dp) -> (bm, 2*Dp), f32 accumulate.
    lin = jnp.dot(x, w_ref[0], preferred_element_type=jnp.float32) + b_ref[0]

    g = jax.nn.sigmoid(lin[:, :dp])                         # EUP
    h = jnp.maximum(lin[:, dp:], 0.0)                       # VPU
    new_x = g * h + (1.0 - g) * x

    act_ref[...] = new_x

    @pl.when(l == pl.num_programs(1) - 1)
    def _():
        o_ref[...] = new_x.astype(o_ref.dtype)


def hw_forward(x, params, *, target_block_m=512):
    """Highway stack forward (inference).

    x: (N, D) activations.
    params: list of (gate_w, gate_b, trans_w, trans_b) per layer with weights
    stored as (in_dim, out_dim) so y = x @ w + b (PyTorch W transposed).
    """
    # TODO(synk): training-mode dropout between layers is not implemented;
    # inference-mode dropout is the identity, which is what we compute.
    N, D = x.shape
    L = len(params)
    dtype = x.dtype
    itemsize = jnp.dtype(dtype).itemsize

    # Pad hidden dim to a lane-dense multiple of 128.
    Dp = max(128, _round_up(D, 128))

    # Row tiling: >= 2 tiles when possible (v7x megacore), 8-row aligned,
    # tile count chosen from N so last-tile waste stays bounded.
    if N <= 8:
        n_tiles = 1
    else:
        n_tiles = max(2, -(-N // target_block_m))
    bm = _round_up(-(-N // n_tiles), 8)
    n_tiles = -(-N // bm)
    n_pad = n_tiles * bm

    x_p = jnp.pad(x, ((0, n_pad - N), (0, Dp - D)))

    # Stack + pad + concatenate weights: W (L, Dp, 2*Dp), B (L, 1, 2*Dp).
    ws, bs = [], []
    for gw, gb, tw, tb in params:
        gw_p = jnp.pad(gw.astype(dtype), ((0, Dp - D), (0, Dp - D)))
        tw_p = jnp.pad(tw.astype(dtype), ((0, Dp - D), (0, Dp - D)))
        gb_p = jnp.pad(gb.astype(jnp.float32), (0, Dp - D))
        tb_p = jnp.pad(tb.astype(jnp.float32), (0, Dp - D))
        ws.append(jnp.concatenate([gw_p, tw_p], axis=1))
        bs.append(jnp.concatenate([gb_p, tb_p]).reshape(1, 2 * Dp))
    W = jnp.stack(ws)                    # (L, Dp, 2*Dp)
    B = jnp.stack(bs)                    # (L, 1, 2*Dp) f32

    # VMEM budget: double-buffered x/out tiles + double-buffered layer weights
    # + f32 activation scratch.  Clamp to v7x's 64 MiB physical VMEM.
    est = (2 * bm * Dp * itemsize                 # x (2 bufs)
           + 2 * bm * Dp * itemsize               # out (2 bufs)
           + 2 * (Dp * 2 * Dp * itemsize + 2 * Dp * 4)  # weights + bias (2 bufs)
           + bm * Dp * 4)                          # activation scratch
    vmem_limit = int(min(max(2 * est, 16 * 1024 * 1024), 64 * 1024 * 1024))

    out = pl.pallas_call(
        _highway_stack_kernel,
        out_shape=jax.ShapeDtypeStruct((n_pad, Dp), dtype),
        grid_spec=pltpu.PrefetchScalarGridSpec(
            num_scalar_prefetch=0,
            grid=(n_tiles, L),
            in_specs=[
                # x row tile: constant along layer axis -> stays VMEM-resident.
                pl.BlockSpec((bm, Dp), lambda i, l: (i, 0)),
                # fused [gate|trans] weight for layer l.
                pl.BlockSpec((1, Dp, 2 * Dp), lambda i, l: (l, 0, 0)),
                # fused [gate|trans] bias for layer l.
                pl.BlockSpec((1, 1, 2 * Dp), lambda i, l: (l, 0, 0)),
            ],
            # Output block index constant along layer axis -> resident,
            # written back to HBM once per row tile (after the last layer).
            out_specs=pl.BlockSpec((bm, Dp), lambda i, l: (i, 0)),
            scratch_shapes=[pltpu.VMEM((bm, Dp), jnp.float32)],
        ),
        compiler_params=pltpu.CompilerParams(
            dimension_semantics=("parallel", "arbitrary"),
            vmem_limit_bytes=vmem_limit,
        ),
    )(x_p, W, B)

    return out[:N, :D]


def hw_forward_ref(x, params):
    """Pure-JAX reference mirroring the PyTorch forward (eval mode)."""
    for gw, gb, tw, tb in params:
        g = jax.nn.sigmoid(x @ gw + gb)
        h = jnp.maximum(x @ tw + tb, 0.0)
        x = g * h + (1.0 - g) * x
    return x


if __name__ == "__main__":
    ins_num, hidden = 64, 32
    num_layers = 2

    key = jax.random.PRNGKey(0)
    keys = jax.random.split(key, 1 + 4 * num_layers)
    x = jax.random.normal(keys[0], (ins_num, hidden), dtype=jnp.float32)

    params = []
    k = 1
    for _ in range(num_layers):
        gate_w = 0.1 * jax.random.normal(keys[k], (hidden, hidden), jnp.float32)
        gate_b = 0.1 * jax.random.normal(keys[k + 1], (hidden,), jnp.float32)
        trans_w = 0.1 * jax.random.normal(keys[k + 2], (hidden, hidden), jnp.float32)
        trans_b = 0.1 * jax.random.normal(keys[k + 3], (hidden,), jnp.float32)
        params.append((gate_w, gate_b, trans_w, trans_b))
        k += 4

    out = hw_forward(x, params)
    out = jax.block_until_ready(out)

    ref = hw_forward_ref(x, params)
    assert out.shape == (ins_num, hidden)
    assert jnp.allclose(out, ref, rtol=1e-5, atol=1e-5), float(
        jnp.max(jnp.abs(out - ref)))
    print("KERNEL_OK")
</pallas_src>

<mosaic_0001>
module attributes {stable_mosaic.version = 11 : i64} {
  func.func @_highway_stack_kernel(%arg0: i32, %arg1: i32, %arg2: memref<32x128xf32, #tpu.memory_space<vmem>>, %arg3: memref<1x128x256xf32, #tpu.memory_space<vmem>>, %arg4: memref<1x1x256xf32, #tpu.memory_space<vmem>>, %arg5: memref<32x128xf32, #tpu.memory_space<vmem>>, %arg6: memref<32x128xf32, #tpu.memory_space<vmem>>) attributes {dimension_semantics = [#tpu.dimension_semantics<parallel>, #tpu.dimension_semantics<arbitrary>], iteration_bounds = array<i64: 2, 2>, scalar_prefetch = 0 : i64, scratch_operands = 1 : i64, tpu.core_type = #tpu.core_type<tc>, window_params = [{transform_indices = @transform_0, window_bounds = array<i64: 32, 128>}, {transform_indices = @transform_1, window_bounds = array<i64: 1, 128, 256>}, {transform_indices = @transform_2, window_bounds = array<i64: 1, 1, 256>}, {transform_indices = @transform_3, window_bounds = array<i64: 32, 128>}]} {
    %c0_i32 = arith.constant 0 : i32
    %0 = arith.cmpi eq, %arg1, %c0_i32 : i32
    %1 = arith.extui %0 : i1 to i32
    %c0_i32_0 = arith.constant 0 : i32
    %2 = arith.cmpi ne, %1, %c0_i32_0 : i32
    scf.if %2 {
      %c0_14 = arith.constant 0 : index
      %c0_15 = arith.constant 0 : index
      %29 = vector.load %arg2[%c0_14, %c0_15] : memref<32x128xf32, #tpu.memory_space<vmem>>, vector<32x128xf32>
      %c0_16 = arith.constant 0 : index
      %c0_17 = arith.constant 0 : index
      %30 = vector.load %arg6[%c0_16, %c0_17] : memref<32x128xf32, #tpu.memory_space<vmem>>, vector<32x128xf32>
      tpu.vector_store %arg6[%c0_16, %c0_17], %29 {strides = array<i32>} : memref<32x128xf32, #tpu.memory_space<vmem>>, vector<32x128xf32>,
    } else {
    }
    %c0 = arith.constant 0 : index
    %c0_1 = arith.constant 0 : index
    %3 = vector.load %arg6[%c0, %c0_1] : memref<32x128xf32, #tpu.memory_space<vmem>>, vector<32x128xf32>
    %c0_2 = arith.constant 0 : index
    %c0_3 = arith.constant 0 : index
    %c0_4 = arith.constant 0 : index
    %4 = vector.load %arg3[%c0_2, %c0_3, %c0_4] : memref<1x128x256xf32, #tpu.memory_space<vmem>>, vector<1x128x256xf32>
    %5 = vector.shape_cast %4 : vector<1x128x256xf32> to vector<128x256xf32>
    %cst = arith.constant dense<0.000000e+00> : vector<32x256xf32>
    %6 = tpu.matmul %3, %5, %cst {dimension_numbers = #tpu.dot_dimension_numbers<[1], [0], [0], [1], [0, 0, 1, 1], [], []>} : vector<32x128xf32>, vector<128x256xf32>, vector<32x256xf32> -> vector<32x256xf32>
    %c0_5 = arith.constant 0 : index
    %c0_6 = arith.constant 0 : index
    %c0_7 = arith.constant 0 : index
    %7 = vector.load %arg4[%c0_5, %c0_6, %c0_7] : memref<1x1x256xf32, #tpu.memory_space<vmem>>, vector<1x1x256xf32>
    %8 = vector.shape_cast %7 : vector<1x1x256xf32> to vector<1x256xf32>
    %9 = vector.broadcast %8 : vector<1x256xf32> to vector<32x256xf32>
    %10 = arith.addf %6, %9 : vector<32x256xf32>
    %11 = vector.extract_strided_slice %10 {offsets = [0, 0], sizes = [32, 128], strides = [1, 1]} : vector<32x256xf32> to vector<32x128xf32>
    %12 = arith.negf %11 : vector<32x128xf32>
    %13 = math.exp %12 : vector<32x128xf32>
    %cst_8 = arith.constant 1.000000e+00 : f32
    %14 = vector.broadcast %cst_8 : f32 to vector<32x128xf32>
    %15 = arith.addf %14, %13 : vector<32x128xf32>
    %16 = arith.divf %14, %15 : vector<32x128xf32>
    %17 = vector.extract_strided_slice %10 {offsets = [0, 128], sizes = [32, 128], strides = [1, 1]} : vector<32x256xf32> to vector<32x128xf32>
    %cst_9 = arith.constant 0.000000e+00 : f32
    %18 = vector.broadcast %cst_9 : f32 to vector<32x128xf32>
    %19 = arith.maximumf %17, %18 : vector<32x128xf32>
    %20 = arith.mulf %16, %19 : vector<32x128xf32>
    %cst_10 = arith.constant 1.000000e+00 : f32
    %21 = vector.broadcast %cst_10 : f32 to vector<32x128xf32>
    %22 = arith.subf %21, %16 : vector<32x128xf32>
    %23 = arith.mulf %22, %3 : vector<32x128xf32>
    %24 = arith.addf %20, %23 : vector<32x128xf32>
    %c0_11 = arith.constant 0 : index
    %c0_12 = arith.constant 0 : index
    %25 = vector.load %arg6[%c0_11, %c0_12] : memref<32x128xf32, #tpu.memory_space<vmem>>, vector<32x128xf32>
    tpu.vector_store %arg6[%c0_11, %c0_12], %24 {strides = array<i32>} : memref<32x128xf32, #tpu.memory_space<vmem>>, vector<32x128xf32>,
    %c1_i32 = arith.constant 1 : i32
    %26 = arith.cmpi eq, %arg1, %c1_i32 : i32
    %27 = arith.extui %26 : i1 to i32
    %c0_i32_13 = arith.constant 0 : i32
    %28 = arith.cmpi ne, %27, %c0_i32_13 : i32
    scf.if %28 {
      %c0_14 = arith.constant 0 : index
      %c0_15 = arith.constant 0 : index
      %29 = vector.load %arg5[%c0_14, %c0_15] : memref<32x128xf32, #tpu.memory_space<vmem>>, vector<32x128xf32>
      tpu.vector_store %arg5[%c0_14, %c0_15], %24 {strides = array<i32>} : memref<32x128xf32, #tpu.memory_space<vmem>>, vector<32x128xf32>,
    } else {
    }
    return
  }
  func.func @transform_0(%arg0: i32, %arg1: i32) -> (i32, i32) {
    %c0_i32 = arith.constant 0 : i32
    %c0_i32_0 = arith.constant 0 : i32
    return %arg0, %c0_i32 : i32, i32
  }
  func.func @transform_1(%arg0: i32, %arg1: i32) -> (i32, i32, i32) {
    %c0_i32 = arith.constant 0 : i32
    %c0_i32_0 = arith.constant 0 : i32
    %c0_i32_1 = arith.constant 0 : i32
    return %arg1, %c0_i32, %c0_i32_0 : i32, i32, i32
  }
  func.func @transform_2(%arg0: i32, %arg1: i32) -> (i32, i32, i32) {
    %c0_i32 = arith.constant 0 : i32
    %c0_i32_0 = arith.constant 0 : i32
    %c0_i32_1 = arith.constant 0 : i32
    return %arg1, %c0_i32, %c0_i32_0 : i32, i32, i32
  }
  func.func @transform_3(%arg0: i32, %arg1: i32) -> (i32, i32) {
    %c0_i32 = arith.constant 0 : i32
    %c0_i32_0 = arith.constant 0 : i32
    return %arg0, %c0_i32 : i32, i32
  }
}

</mosaic_0001>

<bundles_post_ra>
// kernel: tpu_custom_call.1
= control target key start
LH: loop header
LB: loop body
LE: loop exit
PB: predicated region body
PF: predicated region fallthrough
CT: control target
= control target key end

     0   :  { %s1397_s0 = inlined_call_operand.hbm [shape: f32[64,128], index: 0, kind: input, shape index: {}]   ;;  %s1398_s1 = inlined_call_operand.hbm [shape: f32[2,128,256], index: 1, kind: input, shape index: {}]   ;;  %s1399_s2 = inlined_call_operand.vmem [shape: f32[2,1,256], index: 2, kind: input, shape index: {}]   ;;  %s1400_s3 = inlined_call_operand.hbm [shape: f32[64,128], index: 3, kind: output, shape index: {}]  }
   0x1   :  { %1409 = sst [smem:[#allocation15_spill]] %s1397_s0 }
   0x2   :  { %8 = vsyncpa [#allocation4], 0 }
   0x3   :  { %10 = vsyncpa [#allocation4 + $0x1], 0 }
   0x4   :  { %11 = vsyncpa [#allocation7], 0 }
   0x5   :  { %13 = vsyncpa [#allocation7 + $0x1], 0 }
   0x6   :  { %14 = vsyncpa [#allocation5], 0 }
   0x7   :  { %16 = vsyncpa [#allocation5 + $0x1], 0  ;;  %s1023_s12 = smov 0   ;;  %s1025_s13 = smov 0  }
   0x8   :  { %s1027_s14 = smov 0   ;;  %s1029_s15 = smov 0  }
   0x9   :  { %s1031_s16 = smov 0   ;;  %s1033_s17 = smov 0  }
   0xa   :  { %s1035_s18 = smov 0   ;;  %s1037_s19 = smov 0  }
   0xb   :  { %s1039_s20 = smov 0   ;;  %s1041_s21 = smov 0  }
   0xc   :  { %s1043_s22 = smov 0  }
   0xd LB: > { %1410 = sst [smem:[#allocation12_spill]] %s963_s15  ;;  %s598_s23 = sadd.s32 4294967295, %s991_s22   ;;  %s991_s22 = sphi %s1043_s22, %s22_s22   ;;  %s987_s21 = sphi %s1041_s21, %s1443_s21   ;;  %s983_s20 = sphi %s1039_s20, %s1442_s20   ;;  %s979_s19 = sphi %s1037_s19, %s1441_s19   ;;  %s975_s18 = sphi %s1035_s18, %s1440_s18   ;;  %s971_s17 = sphi %s1033_s17, %s1439_s17   ;;  %s967_s16 = sphi %s1031_s16, %s1438_s16   ;;  %s963_s15 = sphi %s1029_s15, %s1437_s15   ;;  %s959_s14 = sphi %s1027_s14, %s1436_s14   ;;  %s955_s13 = sphi %s1025_s13, %s1435_s13   ;;  %s951_s12 = sphi %s1023_s12, %s1434_s12  }
   0xe   : > { %s599_s24 = sadd.s32 4294967294, %s991_s22   ;;  %s34_s25 = sadd.s32 1, %s987_s21 }
   0xf   : > { %p48_p0 = scmp.ne.s32.totalorder %s971_s17, %s967_s16  ;;  %p1402_p1 = scmp.eq.s32.totalorder %s991_s22, 0 }
  0x10   : > { %p54_p2 = scmp.ne.s32.totalorder %s967_s16, %s963_s15  ;;  %p1087_p3 = scmp.eq.s32.totalorder %s598_s23, 0 }
  0x11   : > { %p1093_p4 = por %p1402_p1, %p48_p0  ;;  %p130_p5 = scmp.eq.s32.totalorder %s598_s23, 3 }
  0x12   : > { %p1099_p6 = por %p1087_p3, %p54_p2  ;;  %p136_p7 = scmp.eq.s32.totalorder %s599_s24, 3 }
  0x13   : > { %p1103_p8 = por %p130_p5, %p48_p0  ;;  %p1401_p10 = scmp.lt.s32.totalorder %s991_s22, 4 }
  0x14   : > { %s1413_s29 = scalar_select %p1099_p6, 1, 0 }
  0x15   : > { %s1414_s30 = scalar_select %p1103_p8, 1, 0 }
  0x16   : > { %p1107_p9 = por %p136_p7, %p54_p2  ;;  %s156_s5 = sand.u32 1, %s971_s17  }
  0x17   : > { %s624_s6 = sshll.u32 %s987_s21, 9  ;;  %s602_s7 = sshll.u32 %s156_s5, 5 }
  0x18   : > { %s1415_s4 = scalar_select %p1107_p9, 1, 0 }
  0x19   : > { %s1417_s0 = sld [smem:[#allocation15_spill]]  ;;  %s160_s11 = scalar_lea.vmem [#allocation3], %s602_s7 }
  0x1a   : > { %1416 = sst [smem:[#allocation13_spill]] %s1415_s4  ;;  %s167_s23 = sshll.u32 %s160_s11, 4  ;;  %s1127_s23 = int_to_ptr.vmem [resolvable:$true] %s167_s23 }
  0x1b   : > { %p1123_p11 = pnand %p1401_p10, %p1093_p4  ;;  %s1129_s26 = scalar_lea.sflag [#allocation4], %s156_s5 }
  0x1d   : > { %p807_p13 = pneg %p1123_p11 }
  0x1f   : > { %s1117_s10 = scalar_lea.hbm %s1417_s0, %s624_s6  ;;  %s810_s8 = scalar_lea.hbm %s1417_s0, 1024 }
  0x20   : > { %s805_s6 = scalar_lea.hbm %s1117_s10, 512  ;;  %p811_p4 = scmp.lt.u32.totalorder %s1117_s10, %s1417_s0 }
  0x21   : > { %p806_p12 = scmp.ne.s32.totalorder %s1117_s10, %s805_s6  ;;  %p812_p5 = scmp.lt.u32.totalorder %s810_s8, %s805_s6 }
  0x22   : > { %p814_p10 = scmp.lt.u32.totalorder %s805_s6, %s1117_s10 }
  0x23   : > { %p808_p0 = pnand %p807_p13, %p806_p12  ;;  %p813_p7 = por %p812_p5, %p811_p4 }
  0x25   : > { %p809_p2 = pneg %p808_p0  ;;  %p815_p1 = por %p814_p10, %p813_p7 }
  0x27   : > { %p816_p9 = pnand %p815_p1, %p809_p2 }
  0x29   : > { %819 = shalt.err (!%p816_p9)
}
  0x2a   : > { %s820_s5 = scalar_lea.vmem %s1127_s23, 512  ;;  %s993_s28 = smov [#allocation3]  }
  0x2b   : > { %p821_p12 = scmp.ne.s32.totalorder %s1127_s23, %s820_s5  ;;  %s825_s7 = sshll.u32 %s993_s28, 4  ;;  %s826_s7 = int_to_ptr.vmem [resolvable:$false] %s825_s7 }
  0x2c   : > { %s827_s9 = scalar_lea.vmem %s826_s7, 1024  ;;  %p828_p6 = scmp.lt.s32.totalorder %s1127_s23, %s826_s7 }
  0x2d   : > { %p823_p0 = pnand %p821_p12, %p807_p13  ;;  %p829_p4 = scmp.lt.s32.totalorder %s827_s9, %s820_s5 }
  0x2f   : > { %p824_p8 = pneg %p823_p0  ;;  %p830_p5 = por %p829_p4, %p828_p6 }
  0x31   : > { %p831_p10 = pnand %p830_p5, %p824_p8 }
  0x33   : > { %834 = shalt.err (!%p831_p10)
}
  0x34   : > { %s994_s6 = smov 128   ;;  %s995_s8 = smov 8  }
  0x35   : > { %684 = dma.hbm_to_vmem [thread:$0]  (!%p1123_p11), %s1117_s10, 512, %s1127_s23, %s1129_s26, %s994_s6, %s994_s6, %s995_s8  }
  0x36   : > { %p608_p1 = scmp.ge.s32.totalorder %s991_s22, 1  ;;  %p203_p6 = scmp.lt.s32.totalorder %s991_s22, 5 }
  0x37   : > { %s31_s5 = sadd.s32 1, %s983_s20  ;;  %s67_s28 = sadd.s32 1, %s959_s14 }
  0x38   : > { %p1159_p8 = pnand %p608_p1, %p203_p6  ;;  %p32_p9 = scmp.ge.s32.totalorder %s31_s5, 2 }
  0x39   : > { %p74_p13 = scmp.ne.s32.totalorder %s959_s14, %s955_s13  ;;  %p80_p2 = scmp.ne.s32.totalorder %s955_s13, %s951_s12 }
  0x3a   : > { %s1445_s5 = smov (%p32_p9, %s31_s5), 0  ;;  %s1447_s25 = smov (!%p32_p9, %s34_s25), %s987_s21 }
  0x3b   : > { %1420 = sst [smem:[#allocation14_spill]] %s1445_s5  ;;  %s64_s26 = ssub.s32 %s983_s20, %s1445_s5 }
  0x3c   : > { %p1421_p11 = scmp.eq.s32.totalorder %s991_s22, 0  ;;  %p36_p12 = scmp.ge.s32.totalorder %s1447_s25, 2 }
  0x3d   : > { %p65_p0 = scmp.eq.s32.totalorder %s64_s26, 0  ;;  %p1184_p4 = por %p80_p2, %p1087_p3 }
  0x3e   : > { %p1178_p7 = por %p74_p13, %p1421_p11  ;;  %s177_s12 = sand.u32 1, %s959_s14  }
  0x3f   : > { %s1423_s23 = scalar_select %p1184_p4, 1, 0 }
  0x40   : > { %s1449_s25 = smov (%p36_p12, %s1447_s25), 0  ;;  %s605_s9 = sshll.u32 %s177_s12, 8 }
  0x41   : > { %s1192_s24 = scalar_select %p65_p0, %s959_s14, %s67_s28  }
  0x42   : > { %s38_s7 = ssub.s32 %s987_s21, %s1449_s25  ;;  %s625_s6 = sshll.u32 %s983_s20, 12 }
  0x43   : > { %p39_p5 = scmp.eq.s32.totalorder %s38_s7, 0  ;;  %s1424_s8 = sadd.s32 1, %s971_s17 }
  0x44   : > { %s1205_s27 = scalar_lea.hbm %s1398_s1, %s625_s6  ;;  %s181_s4 = scalar_lea.vmem [#allocation6], %s605_s9 }
  0x45   : > { %s1200_s0 = scalar_select %p39_p5, %s971_s17, %s1424_s8  }
  0x46   : > { %s188_s15 = sshll.u32 %s181_s4, 4  ;;  %p1425_p3 = scmp.lt.s32.totalorder %s991_s22, 4  ;;  %s1207_s15 = int_to_ptr.vmem [resolvable:$true] %s188_s15 }
  0x47   : > { %s1217_s7 = scalar_lea.sflag [#allocation7], %s177_s12  ;;  %s835_s5 = scalar_lea.hbm %s1205_s27, 4096 }
  0x48   : > { %p1213_p10 = pnand %p1425_p3, %p1178_p7  ;;  %p836_p1 = scmp.ne.s32.totalorder %s1205_s27, %s835_s5 }
  0x49   : > { %s840_s10 = scalar_lea.hbm %s1398_s1, 8192  ;;  %p841_p2 = scmp.lt.u32.totalorder %s1205_s27, %s1398_s1 }
  0x4a   : > { %p837_p6 = pneg %p1213_p10  ;;  %p842_p11 = scmp.lt.u32.totalorder %s840_s10, %s835_s5 }
  0x4b   : > { %p844_p12 = scmp.lt.u32.totalorder %s835_s5, %s1205_s27 }
  0x4c   : > { %p838_p9 = pnand %p837_p6, %p836_p1  ;;  %p843_p7 = por %p842_p11, %p841_p2 }
  0x4e   : > { %p839_p13 = pneg %p838_p9  ;;  %p845_p0 = por %p844_p12, %p843_p7 }
  0x50   : > { %p846_p5 = pnand %p845_p0, %p839_p13 }
  0x52   : > { %849 = shalt.err (!%p846_p5)
}
  0x53   : > { %s850_s12 = scalar_lea.vmem %s1207_s15, 4096  ;;  %s996_s26 = smov [#allocation6]  }
  0x54   : > { %p851_p3 = scmp.ne.s32.totalorder %s1207_s15, %s850_s12  ;;  %s855_s4 = sshll.u32 %s996_s26, 4  ;;  %s856_s4 = int_to_ptr.vmem [resolvable:$false] %s855_s4 }
  0x55   : > { %s857_s9 = scalar_lea.vmem %s856_s4, 8192  ;;  %p858_p4 = scmp.lt.s32.totalorder %s1207_s15, %s856_s4 }
  0x56   : > { %p853_p1 = pnand %p851_p3, %p837_p6  ;;  %p859_p2 = scmp.lt.s32.totalorder %s857_s9, %s850_s12 }
  0x58   : > { %p854_p9 = pneg %p853_p1  ;;  %p860_p11 = por %p859_p2, %p858_p4 }
  0x5a   : > { %p861_p7 = pnand %p860_p11, %p854_p9 }
  0x5c   : > { %864 = shalt.err (!%p861_p7)
}
  0x5d   : > { %s997_s5 = smov 256   ;;  %s998_s10 = smov 16  }
  0x5e   : > { %687 = dma.hbm_to_vmem [thread:$0]  (!%p1213_p10), %s1205_s27, 4096, %s1207_s15, %s1217_s7, %s997_s5, %s997_s5, %s998_s10  }
  0x5f   : > { %207 = sbr.rel (%p1159_p8) target bundleno = 430 (0x1ae), region = 32  ;;  %s1248_s6 = sand.u32 (!%p1159_p8), 1, %s967_s16  }
  0x60   : > { %s609_s8 = sshll.u32 (!%p1159_p8), %s1248_s6, 5  ;;  %s210_s12 = scalar_lea.sflag (!%p1159_p8), [#allocation4], %s1248_s6 }
  0x61   : > { %s213_s26 = scalar_lea.vmem (!%p1159_p8), [#allocation3], %s609_s8  ;;  %p1427_p4 = scmp.ne.s32.totalorder (!%p1159_p8), %s1413_s29, 0 }
  0x66   : > { %938 = dma.done.wait (%p1427_p4), %s210_s12, 512  }
  0x67   : > { %940 = vsyncadd (%p1427_p4), %s210_s12, 4294966784  ;;  %s218_s15 = sand.u32 1, %s955_s13   ;;  %p1428_p8 = scmp.ne.s32.totalorder %s1423_s23, 0 }
  0x68   : > { %s610_s27 = sshll.u32 %s218_s15, 8  ;;  %s219_s11 = scalar_lea.sflag [#allocation7], %s218_s15 }
  0x69   : > { %s1257_s28 = scalar_lea.vmem [#allocation6], %s610_s27 }
  0x6a   : > { %942 = dma.done.wait (%p1428_p8), %s219_s11, 4096  }
  0x6b   : > { %944 = vsyncadd (%p1428_p8), %s219_s11, 4294963200  ;;  %p255_p10 = scmp.lt.s32.totalorder %s975_s18, 1  ;;  %s1270_s10 = scalar_lea.vmem [#allocation8], %s609_s8 }
  0x6c   : > { %p613_p6 = scmp.ne.s32.totalorder %s975_s18, 0 }
  0x6d   : > { %s256_s7 = scalar_select %p255_p10, %s975_s18, 1 }
  0x6e   : > { %263 = sbr.rel (%p613_p6) target bundleno = 117 (0x75), region = 44  ;;  %v264_v0 = vld [vmem:[%s213_s26] sm:$0xff] (!%p613_p6)  ;;  %v265_v1 = vld [vmem:[%s213_s26 + $0x8] sm:$0xff] (!%p613_p6)  ;;  %v266_v2 = vld [vmem:[%s213_s26 + $0x10] sm:$0xff] (!%p613_p6) }
  0x6f   : > { %s612_s4 = sshll.u32 %s256_s7, 1  ;;  %268 = vst [vmem:[#allocation2] sm:$0xff] (!%p613_p6), %v264_v0  ;;  %269 = vst [vmem:[#allocation2 + $0x8] sm:$0xff] (!%p613_p6), %v265_v1  ;;  %v267_v3 = vld [vmem:[%s213_s26 + $0x18] sm:$0xff] (!%p613_p6) }
  0x70   : > { %s1268_s5 = scalar_lea.vmem %s1399_s2, %s612_s4  ;;  %270 = vst [vmem:[#allocation2 + $0x10] sm:$0xff] (!%p613_p6), %v266_v2  ;;  %271 = vst [vmem:[#allocation2 + $0x18] sm:$0xff] (!%p613_p6), %v267_v3 }
  0x75 PF: > { %v277_v4 = vld [vmem:[%s1257_s28 + $0x8] sm:$0xff]  ;;  %v279_v5 = vld [vmem:[%s1257_s28 + $0x18] sm:$0xff]  ;;  %v276_v6 = vld [vmem:[%s1257_s28] sm:$0xff]  ;;  %v999_v11 = vmov 0.0   ;;  %v310_v57 = vlaneseq  ;;  %p618_p13 = scmp.ne.s32.totalorder %s975_s18, 1 }
  0x76   : > { %v627_v7 = vpack.c.bf16 %v279_v5, %v277_v4  ;;  %v278_v8 = vld [vmem:[%s1257_s28 + $0x10] sm:$0xff]  ;;  %v281_v9 = vld [vmem:[%s1257_s28 + $0x28] sm:$0xff]  ;;  %v283_v10 = vld [vmem:[%s1257_s28 + $0x38] sm:$0xff]  ;;  %384 = vmatprep.mubr.f32.mxu0 %v999_v11  ;;  %396 = vmatprep.mubr.f32.mxu1 %v999_v11 }
  0x77   : > { %v629_v12 = vpack.c.bf16 %v278_v8, %v276_v6  ;;  %v631_v13 = vpack.c.bf16 %v283_v10, %v281_v9  ;;  %v280_v14 = vld [vmem:[%s1257_s28 + $0x20] sm:$0xff]  ;;  %v282_v15 = vld [vmem:[%s1257_s28 + $0x30] sm:$0xff]  ;;  %v285_v16 = vld [vmem:[%s1257_s28 + $0x48] sm:$0xff]  ;;  %v311_v58 = vshrl.u32 %v310_v57, 7 }
  0x78   : > { %628 = vmatprep.subr.bf16.mxu0 %v627_v7  ;;  %659 = vmatprep.subr.bf16.mxu1 %v627_v7  ;;  %v287_v17 = vld [vmem:[%s1257_s28 + $0x58] sm:$0xff]  ;;  %v633_v18 = vpack.c.bf16 %v282_v15, %v280_v14  ;;  %v284_v20 = vld [vmem:[%s1257_s28 + $0x40] sm:$0xff]  ;;  %v286_v21 = vld [vmem:[%s1257_s28 + $0x50] sm:$0xff] }
  0x79   : > { %630 = vmatpush1.bf16.msra.mxu0 %v629_v12  ;;  %667 = vmatpush1.bf16.msra.mxu1 %v629_v12  ;;  %v635_v19 = vpack.c.bf16 %v287_v17, %v285_v16  ;;  %v289_v22 = vld [vmem:[%s1257_s28 + $0x68] sm:$0xff]  ;;  %v291_v23 = vld [vmem:[%s1257_s28 + $0x78] sm:$0xff]  ;;  %v637_v24 = vpack.c.bf16 %v286_v21, %v284_v20  ;;  %v288_v26 = vld [vmem:[%s1257_s28 + $0x60] sm:$0xff]  ;;  %v312_v59 = vsub.s32 0, %v311_v58  ;;  %v316_v15 = vsub.s32 1, %v311_v58 }
  0x7a   : > { %632 = vmatprep.subr.bf16.mxu0 %v631_v13  ;;  %660 = vmatprep.subr.bf16.mxu1 %v631_v13  ;;  %v639_v25 = vpack.c.bf16 %v291_v23, %v289_v22  ;;  %v290_v27 = vld [vmem:[%s1257_s28 + $0x70] sm:$0xff]  ;;  %v293_v28 = vld [vmem:[%s1257_s28 + $0x88] sm:$0xff]  ;;  %v295_v29 = vld [vmem:[%s1257_s28 + $0x98] sm:$0xff] }
  0x7b   : > { %v641_v30 = vpack.c.bf16 %v290_v27, %v288_v26  ;;  %v643_v31 = vpack.c.bf16 %v295_v29, %v293_v28  ;;  %v292_v32 = vld [vmem:[%s1257_s28 + $0x80] sm:$0xff]  ;;  %v294_v33 = vld [vmem:[%s1257_s28 + $0x90] sm:$0xff]  ;;  %v297_v34 = vld [vmem:[%s1257_s28 + $0xa8] sm:$0xff] }
  0x7c   : > { %v299_v35 = vld [vmem:[%s1257_s28 + $0xb8] sm:$0xff]  ;;  %v645_v36 = vpack.c.bf16 %v294_v33, %v292_v32  ;;  %v296_v38 = vld [vmem:[%s1257_s28 + $0xa0] sm:$0xff]  ;;  %v298_v39 = vld [vmem:[%s1257_s28 + $0xb0] sm:$0xff] }
  0x7d   : > { %634 = vmatpush1.bf16.msra.mxu0 %v633_v18  ;;  %668 = vmatpush1.bf16.msra.mxu1 %v633_v18  ;;  %v647_v37 = vpack.c.bf16 %v299_v35, %v297_v34  ;;  %v301_v40 = vld [vmem:[%s1257_s28 + $0xc8] sm:$0xff]  ;;  %v303_v41 = vld [vmem:[%s1257_s28 + $0xd8] sm:$0xff]  ;;  %v649_v42 = vpack.c.bf16 %v298_v39, %v296_v38  ;;  %v300_v44 = vld [vmem:[%s1257_s28 + $0xc0] sm:$0xff] }
  0x7e   : > { %636 = vmatprep.subr.bf16.mxu0 %v635_v19  ;;  %661 = vmatprep.subr.bf16.mxu1 %v635_v19  ;;  %v651_v43 = vpack.c.bf16 %v303_v41, %v301_v40  ;;  %v302_v45 = vld [vmem:[%s1257_s28 + $0xd0] sm:$0xff]  ;;  %v305_v46 = vld [vmem:[%s1257_s28 + $0xe8] sm:$0xff]  ;;  %v307_v47 = vld [vmem:[%s1257_s28 + $0xf8] sm:$0xff] }
  0x7f   : > { %v653_v48 = vpack.c.bf16 %v302_v45, %v300_v44  ;;  %v655_v49 = vpack.c.bf16 %v307_v47, %v305_v46  ;;  %v304_v50 = vld [vmem:[%s1257_s28 + $0xe0] sm:$0xff]  ;;  %v306_v51 = vld [vmem:[%s1257_s28 + $0xf0] sm:$0xff]  ;;  %v1312_v55 = vld [vmem:[#allocation2 + $0x8] sm:$0xff] }
  0x80   : > { %v657_v52 = vpack.c.bf16 %v306_v51, %v304_v50  ;;  %v272_v53 = vld [vmem:[#allocation2] sm:$0xff]  ;;  %v1307_v54 = vld [vmem:[#allocation2 + $0x10] sm:$0xff]  ;;  %v1314_v56 = vld [vmem:[#allocation2 + $0x18] sm:$0xff] }
  0x81   : > { %638 = vmatpush1.bf16.msra.mxu0 %v637_v24  ;;  %669 = vmatpush1.bf16.msra.mxu1 %v637_v24  ;;  %v308_v60 = vld [vmem:[%s1268_s5] sm:$0x3] }
  0x82   : > { %640 = vmatprep.subr.bf16.mxu0 %v639_v25  ;;  %662 = vmatprep.subr.bf16.mxu1 %v639_v25  ;;  %v313_v61 = vrot.slane %v308_v60, %v312_v59  ;;  %v317_v20 = vrot.slane %v308_v60, %v316_v15 }
  0x85   : > { %642 = vmatpush1.bf16.msra.mxu0 %v641_v30  ;;  %670 = vmatpush1.bf16.msra.mxu1 %v641_v30 }
  0x86   : > { %644 = vmatprep.subr.bf16.mxu0 %v643_v31  ;;  %663 = vmatprep.subr.bf16.mxu1 %v643_v31 }
  0x89   : > { %646 = vmatpush1.bf16.msra.mxu0 %v645_v36  ;;  %671 = vmatpush1.bf16.msra.mxu1 %v645_v36 }
  0x8a   : > { %648 = vmatprep.subr.bf16.mxu0 %v647_v37  ;;  %664 = vmatprep.subr.bf16.mxu1 %v647_v37 }
  0x8d   : > { %650 = vmatpush1.bf16.msra.mxu0 %v649_v42  ;;  %672 = vmatpush1.bf16.msra.mxu1 %v649_v42 }
  0x8e   : > { %652 = vmatprep.subr.bf16.mxu0 %v651_v43  ;;  %665 = vmatprep.subr.bf16.mxu1 %v651_v43 }
  0x91   : > { %654 = vmatpush1.bf16.msra.mxu0 %v653_v48  ;;  %673 = vmatpush1.bf16.msra.mxu1 %v653_v48 }
  0x92   : > { %656 = vmatprep.subr.bf16.mxu0 %v655_v49  ;;  %666 = vmatprep.subr.bf16.mxu1 %v655_v49 }
  0x95   : > { %658 = vmatpush1.bf16.msra.mxu0 %v657_v52  ;;  %674 = vmatpush1.bf16.msra.mxu1 %v657_v52 }
  0x98   : > { %385 = vmatmul.mubr.f32.vlgmr.msra.gmra.mrb[0].mxu0 %v272_v53  ;;  %397 = vmatmul.mubr.f32.vlgmr.msra.gmra.mrb[0].mxu1 %v1307_v54 }
  0x99   : > { %390 = vmatprep.mubr.f32.mxu0 %v999_v11  ;;  %402 = vmatprep.mubr.f32.mxu1 %v999_v11 }
  0x9c   : > { %391 = vmatmul.mubr.f32.gmra.mrb[2].mxu0 %v1312_v55  ;;  %403 = vmatmul.mubr.f32.gmra.mrb[2].mxu1 %v1314_v56 }
 0x16b   : > { %v386_v62 = vpop.f32.mrb[0].mxu0  ;;  %v398_v63 = vpop.f32.mrb[0].mxu1 }
 0x16c   : > { %v387_v0 = vadd.f32 %v386_v62, %v313_v61  ;;  %v399_v1 = vadd.f32 %v398_v63, %v313_v61  ;;  %v388_v2 = vpop.f32.mrb[1].mxu0  ;;  %v400_v3 = vpop.f32.mrb[1].mxu1 }
 0x16d   : > { %v389_v24 = vadd.f32 %v388_v2, %v317_v20  ;;  %v401_v25 = vadd.f32 %v400_v3, %v317_v20 }
 0x16e   : > { %v614_v4 = vmul.f32 -1.442695, %v387_v0  ;;  %v616_v5 = vmul.f32 -1.442695, %v399_v1 }
 0x16f   : > { %v392_v6 = vpop.f32.mrb[2].mxu0  ;;  %v404_v7 = vpop.f32.mrb[2].mxu1  ;;  %v433_v26 = vmax.f32 %v389_v24, 0.0  ;;  %v435_v29 = vmax.f32 %v401_v25, 0.0 }
 0x170   : > { %789 = vpow2.f32 %v614_v4  ;;  %v393_v8 = vadd.f32 %v392_v6, %v313_v61  ;;  %v405_v9 = vadd.f32 %v404_v7, %v313_v61  ;;  %v394_v10 = vpop.f32.mrb[3].mxu0  ;;  %v406_v11 = vpop.f32.mrb[3].mxu1 }
 0x171   : > { %791 = vpow2.f32 %v616_v5  ;;  %v395_v27 = vadd.f32 %v394_v10, %v317_v20  ;;  %v407_v30 = vadd.f32 %v406_v11, %v317_v20 }
 0x172   : > { %v615_v12 = vmul.f32 -1.442695, %v393_v8  ;;  %v617_v13 = vmul.f32 -1.442695, %v405_v9 }
 0x173   : > { %v434_v37 = vmax.f32 %v395_v27, 0.0  ;;  %v436_v40 = vmax.f32 %v407_v30, 0.0 }
 0x174   : > { %793 = vpow2.f32 %v615_v12 }
 0x175   : > { %795 = vpow2.f32 %v617_v13 }
 0x17a   : > { %v790_v14 = vpop.eup %789 }
 0x17b   : > { %v792_v16 = vpop.eup %791  ;;  %v421_v17 = vadd.f32 1.0, %v790_v14 }
 0x17c   : > { %v423_v18 = vadd.f32 1.0, %v792_v16 }
 0x17d   : > { %797 = vrcp.f32 %v421_v17 }
 0x17e   : > { %v794_v19 = vpop.eup %793  ;;  %799 = vrcp.f32 %v423_v18 }
 0x17f   : > { %v796_v21 = vpop.eup %795  ;;  %v422_v22 = vadd.f32 1.0, %v794_v19 }
 0x180   : > { %v424_v23 = vadd.f32 1.0, %v796_v21 }
 0x181   : > { %801 = vrcp.f32 %v422_v22 }
 0x182   : > { %803 = vrcp.f32 %v424_v23 }
 0x187   : > { %v798_v28 = vpop.eup %797 }
 0x188   : > { %v800_v31 = vpop.eup %799  ;;  %v437_v32 = vmul.f32 %v798_v28, %v433_v26  ;;  %v441_v33 = vsub.f32 1.0, %v798_v28 }
 0x189   : > { %v439_v34 = vmul.f32 %v800_v31, %v435_v29  ;;  %v443_v35 = vsub.f32 1.0, %v800_v31 }
 0x18a   : > { %v445_v36 = vmul.f32 %v441_v33, %v272_v53 }
 0x18b   : > { %v802_v38 = vpop.eup %801  ;;  %v447_v39 = vmul.f32 %v443_v35, %v1307_v54 }
 0x18c   : > { %v804_v41 = vpop.eup %803  ;;  %v449_v42 = vadd.f32 %v445_v36, %v437_v32  ;;  %v438_v43 = vmul.f32 %v802_v38, %v434_v37  ;;  %v442_v44 = vsub.f32 1.0, %v802_v38 }
 0x18d   : > { %v451_v45 = vadd.f32 %v447_v39, %v439_v34  ;;  %v440_v46 = vmul.f32 %v804_v41, %v436_v40  ;;  %v444_v47 = vsub.f32 1.0, %v804_v41  ;;  %460 = sbr.rel (%p618_p13) target bundleno = 404 (0x194), region = 48 }
 0x18e   : > { %453 = vst [vmem:[#allocation2] sm:$0xff] %v449_v42  ;;  %v446_v48 = vmul.f32 %v442_v44, %v1312_v55  ;;  %461 = vst [vmem:[%s1270_s10] sm:$0xff] (!%p618_p13), %v449_v42 }
 0x18f   : > { %455 = vst [vmem:[#allocation2 + $0x10] sm:$0xff] %v451_v45  ;;  %v448_v49 = vmul.f32 %v444_v47, %v1314_v56  ;;  %463 = vst [vmem:[%s1270_s10 + $0x10] sm:$0xff] (!%p618_p13), %v451_v45 }
 0x190   : > { %v450_v50 = vadd.f32 %v446_v48, %v438_v43 }
 0x191   : > { %v452_v51 = vadd.f32 %v448_v49, %v440_v46 }
 0x192   : > { %454 = vst [vmem:[#allocation2 + $0x8] sm:$0xff] %v450_v50  ;;  %462 = vst [vmem:[%s1270_s10 + $0x8] sm:$0xff] (!%p618_p13), %v450_v50 }
 0x193   : > { %456 = vst [vmem:[#allocation2 + $0x18] sm:$0xff] %v452_v51  ;;  %464 = vst [vmem:[%s1270_s10 + $0x18] sm:$0xff] (!%p618_p13), %v452_v51 }
 0x194 PF: > { %s626_s23 = sshll.u32 %s979_s19, 9  ;;  %s479_s18 = sshll.u32 %s1270_s10, 4  ;;  %s1334_s18 = int_to_ptr.vmem [resolvable:$true] %s479_s18 }
 0x195   : > { %s1331_s26 = scalar_lea.hbm %s1400_s3, %s626_s23  ;;  %s466_s15 = scalar_lea.sflag [#allocation5], %s1248_s6 }
 0x196   : > { %s865_s27 = scalar_lea.vmem %s1334_s18, 512  ;;  %p1429_p0 = scmp.ne.s32.totalorder %s1414_s30, 0 }
 0x197   : > { %p866_p12 = scmp.ne.s32.totalorder %s1334_s18, %s865_s27  ;;  %s1000_s11 = smov [#allocation8]  }
 0x198   : > { %s869_s28 = sshll.u32 %s1000_s11, 4  ;;  %s870_s28 = int_to_ptr.vmem [resolvable:$false] %s869_s28 }
 0x199   : > { %p867_p5 = pnand %p866_p12, %p1429_p0  ;;  %s871_s19 = scalar_lea.vmem %s870_s28, 1024 }
 0x19a   : > { %p872_p1 = scmp.lt.s32.totalorder %s1334_s18, %s870_s28  ;;  %p873_p9 = scmp.lt.s32.totalorder %s871_s19, %s865_s27 }
 0x19b   : > { %p868_p3 = pneg %p867_p5 }
 0x19c   : > { %p874_p2 = por %p873_p9, %p872_p1 }
 0x19e   : > { %p875_p11 = pnand %p874_p2, %p868_p3 }
 0x1a0   : > { %878 = shalt.err (!%p875_p11)
}
 0x1a1   : > { %s879_s7 = scalar_lea.hbm %s1331_s26, 512  ;;  %s883_s29 = scalar_lea.hbm %s1400_s3, 1024 }
 0x1a2   : > { %p880_p7 = scmp.ne.s32.totalorder %s1331_s26, %s879_s7  ;;  %p884_p10 = scmp.lt.u32.totalorder %s1331_s26, %s1400_s3 }
 0x1a3   : > { %p885_p6 = scmp.lt.u32.totalorder %s883_s29, %s879_s7  ;;  %p887_p12 = scmp.lt.u32.totalorder %s879_s7, %s1331_s26 }
 0x1a4   : > { %p881_p4 = pnand %p880_p7, %p1429_p0 }
 0x1a5   : > { %p886_p13 = por %p885_p6, %p884_p10 }
 0x1a6   : > { %p882_p8 = pneg %p881_p4 }
 0x1a7   : > { %p888_p5 = por %p887_p12, %p886_p13 }
 0x1a9   : > { %p889_p3 = pnand %p888_p5, %p882_p8 }
 0x1ab   : > { %892 = shalt.err (!%p889_p3)
}
 0x1ac   : > { %s1001_s23 = smov 128   ;;  %s1002_s8 = smov 8  }
 0x1ad   : > { %679 = dma.vmem_to_hbm [thread:$0]  (%p1429_p0), %s1334_s18, 512, %s1331_s26, %s466_s15, %s1001_s23, %s1001_s23, %s1002_s8  }
 0x1ae PF: > { %s1430_s12 = sld [smem:[#allocation12_spill]]  ;;  %s1431_s27 = sld [smem:[#allocation13_spill]] }
 0x1af   : > { %p693_p1 = scmp.ge.s32.totalorder %s991_s22, 2 }
 0x1b4   : > { %s494_s11 = sand.u32 1, %s1430_s12   ;;  %p1432_p9 = scmp.ne.s32.totalorder %s1431_s27, 0 }
 0x1b5   : > { %s495_s28 = scalar_lea.sflag [#allocation5], %s494_s11 }
 0x1b6   : > { %p689_p2 = pnand %p693_p1, %p1432_p9 }
 0x1b8   : > { %946 = dma.done.wait (!%p689_p2), %s495_s28, 512  }
 0x1b9   : > { %948 = vsyncadd (!%p689_p2), %s495_s28, 4294966784  ;;  %s22_s22 = sadd.s32 1, %s991_s22   ;;  %s1433_s30 = sld [smem:[#allocation14_spill]] }
 0x1ba   : > { %p19_p11 = scmp.ge.s32.totalorder %s22_s22, 6   ;;  %s1434_s12 = smov %s955_s13 }
 0x1bb   : > { %s1435_s13 = smov %s959_s14  ;;  %s1436_s14 = smov %s1192_s24 }
 0x1bc   : > { %s1437_s15 = smov %s967_s16  ;;  %s1438_s16 = smov %s971_s17 }
 0x1bd   : > { %s1439_s17 = smov %s1200_s0  ;;  %s1440_s18 = smov %s983_s20 }
 0x1be   : > { %s1441_s19 = smov %s987_s21  ;;  %s1443_s21 = smov %s1449_s25 }
 0x1bf   : > { %s1442_s20 = smov %s1433_s30  ;;  %21 = sbr.rel (!%p19_p11) target bundleno = 13 (0xd), region = 101 }
 0x1c6   :  { %500 = vsyncpa [#allocation4], 1 }
 0x1c7   :  { %502 = vsyncpa [#allocation4 + $0x1], 1 }
 0x1c8   :  { %503 = vsyncpa [#allocation7], 1 }
 0x1c9   :  { %505 = vsyncpa [#allocation7 + $0x1], 1 }
 0x1ca   :  { %506 = vsyncpa [#allocation5], 1 }
 0x1cb   :  { %508 = vsyncpa [#allocation5 + $0x1], 1 }

</bundles_post_ra>
